<compile_context>
chip_gen: v7x
topology: tpu7x:2x2x1
jax: 0.10.0
libtpu: 0.0.40
codegen_flags: <defaults>
</compile_context>

<pallas_src>
import functools

import jax
import jax.numpy as jnp
from jax.experimental import pallas as pl
from jax.experimental.pallas import tpu as pltpu


def _matmul_bias_relu_kernel(x_ref, w_ref, b_ref, o_ref):
    # x_ref: (1, TOH, OW, K)      one row-tile of im2col patches (lane-dense K)
    # w_ref: (K, Coutp)           flattened conv weights
    # b_ref: (1, Coutp)           f32 bias
    # o_ref: (1, TOH, OW, Coutp)  output row-tile
    _, toh, ow, k = x_ref.shape
    coutp = o_ref.shape[-1]

    # Merge the sublane dims (TOH, OW) -> M; the lane (K) dim is untouched, so this is
    # a free reshape.  One wide-K MXU matmul with f32 accumulation.
    patch = x_ref[...].reshape(toh * ow, k)
    acc = jnp.dot(patch, w_ref[...], preferred_element_type=jnp.float32)

    out = jnp.maximum(acc + b_ref[...], 0.0)            # bias + ReLU in f32
    o_ref[...] = out.reshape(1, toh, ow, coutp).astype(o_ref.dtype)


def _round_up(x, m):
    return ((x + m - 1) // m) * m


def _pick_row_tile(oh, ow, target_m=512):
    """Pick TOH so the matmul has ~target_m rows (amortizes grid-step overhead)."""
    return max(1, min(oh, target_m // max(ow, 1)))


def conv_block_forward(x_nchw, weight_oihw, bias, *, stride=1, padding=0,
                       mxu_dtype=None):
    """Conv2d(stride, padding) + ReLU, matching torch.nn.Conv2d semantics (NCHW in/out)."""
    N, Cin, H, W = x_nchw.shape
    Cout, _, KH, KW = weight_oihw.shape
    s = int(stride)
    OH = (H + 2 * padding - KH) // s + 1
    OW = (W + 2 * padding - KW) // s + 1
    K = KH * KW * Cin

    # Adaptive Cout padding: dense 128-lane stores only when the write amplification is
    # small; for tiny Cout a masked store is cheaper than 16x HBM writes.
    if Cout % 128 == 0:
        Coutp = Cout
    elif Cout > 64:
        Coutp = _round_up(Cout, 128)
    else:
        Coutp = _round_up(Cout, 8)

    # ---- wrapper-side layout prep (plain XLA glue) ----
    x = jnp.transpose(x_nchw, (0, 2, 3, 1))                       # NCHW -> NHWC
    if mxu_dtype is not None:                                     # cast once, wrapper-side
        x = x.astype(mxu_dtype)
    if padding:
        x = jnp.pad(x, ((0, 0), (padding, padding), (padding, padding), (0, 0)))

    # im2col: tap order (kh, kw, cin) -- must match the weight reshape below.
    cols = []
    for kh in range(KH):
        for kw in range(KW):
            cols.append(x[:, kh:kh + (OH - 1) * s + 1:s,
                             kw:kw + (OW - 1) * s + 1:s, :])
    x_cols = cols[0] if len(cols) == 1 else jnp.concatenate(cols, axis=-1)  # (N,OH,OW,K)

    # Row tiling; pad OH up so every tile is full (padded rows sliced off afterwards).
    TOH = _pick_row_tile(OH, OW)
    OHp = _round_up(OH, TOH)
    if OHp != OH:
        x_cols = jnp.pad(x_cols, ((0, 0), (0, OHp - OH), (0, 0), (0, 0)))
    grid = (N, OHp // TOH)

    # Weight OIHW -> (KH*KW*Cin, Coutp), same tap order as the im2col build.
    w_mat = jnp.transpose(weight_oihw, (2, 3, 1, 0)).reshape(K, Cout)
    if Coutp != Cout:
        w_mat = jnp.pad(w_mat, ((0, 0), (0, Coutp - Cout)))
    if mxu_dtype is not None:
        w_mat = w_mat.astype(mxu_dtype)
    b = bias.astype(jnp.float32)
    if Coutp != Cout:
        b = jnp.pad(b, (0, Coutp - Cout))
    b = b.reshape(1, Coutp)

    out_dtype = x_nchw.dtype
    x_bytes = jnp.dtype(x_cols.dtype).itemsize
    o_bytes = jnp.dtype(out_dtype).itemsize
    x_blk = TOH * OW * K * x_bytes
    o_blk = TOH * OW * Coutp * o_bytes
    vmem_needed = 2 * (x_blk + o_blk) + K * Coutp * x_bytes + Coutp * 4
    vmem_limit = int(min(max(2 * vmem_needed, 4 << 20), 64 << 20))

    cost = pl.CostEstimate(
        flops=2 * N * OHp * OW * K * Coutp,
        transcendentals=0,
        bytes_accessed=(x_cols.size * x_bytes + K * Coutp * x_bytes
                        + N * OHp * OW * Coutp * o_bytes),
    )

    out = pl.pallas_call(
        _matmul_bias_relu_kernel,
        out_shape=jax.ShapeDtypeStruct((N, OHp, OW, Coutp), out_dtype),
        grid=grid,
        in_specs=[
            pl.BlockSpec((1, TOH, OW, K), lambda n, r: (n, r, 0, 0)),
            pl.BlockSpec((K, Coutp), lambda n, r: (0, 0)),
            pl.BlockSpec((1, Coutp), lambda n, r: (0, 0)),
        ],
        out_specs=pl.BlockSpec((1, TOH, OW, Coutp), lambda n, r: (n, r, 0, 0)),
        compiler_params=pltpu.CompilerParams(
            dimension_semantics=("parallel", "parallel"),
            vmem_limit_bytes=vmem_limit,
        ),
        cost_estimate=cost,
    )(x_cols, w_mat, b)

    out = out[:, :OH, :, :Cout]                          # drop OH / Cout padding
    return jnp.transpose(out, (0, 3, 1, 2))              # NHWC -> NCHW


def reference_conv_relu(x_nchw, weight_oihw, bias, *, stride=1, padding=0):
    """Pure-JAX reference for correctness checking."""
    y = jax.lax.conv_general_dilated(
        x_nchw, weight_oihw,
        window_strides=(stride, stride),
        padding=[(padding, padding), (padding, padding)],
        dimension_numbers=("NCHW", "OIHW", "NCHW"),
    )
    y = y + bias.reshape(1, -1, 1, 1)
    return jnp.maximum(y, 0.0)


if __name__ == "__main__":
    # ConvBlock(in_channels=4, out_channels=8, kernel=3, stride, padding=1)
    N, Cin, H, W = 2, 4, 16, 16
    Cout, Kk = 8, 3

    key = jax.random.PRNGKey(0)
    kx, kw, kb = jax.random.split(key, 3)
    x = jax.random.normal(kx, (N, Cin, H, W), dtype=jnp.float32)
    weight = jax.random.normal(kw, (Cout, Cin, Kk, Kk), dtype=jnp.float32) * 0.1
    bias = jax.random.normal(kb, (Cout,), dtype=jnp.float32) * 0.1

    # f32 MXU path: stride=1 and stride=2 (exact tolerance)
    for stride, padding in [(1, 1), (2, 1)]:
        fwd = jax.jit(functools.partial(conv_block_forward,
                                        stride=stride, padding=padding))
        y = fwd(x, weight, bias)
        jax.block_until_ready(y)
        y_ref = reference_conv_relu(x, weight, bias, stride=stride, padding=padding)
        assert y.shape == y_ref.shape, (y.shape, y_ref.shape)
        assert jnp.allclose(y, y_ref, atol=1e-4, rtol=1e-4), \
            f"mismatch vs reference (f32, stride={stride})"

    # bf16 MXU path (the v6e/v7x production default) -- looser tolerance
    fwd_bf16 = jax.jit(functools.partial(conv_block_forward, stride=1, padding=1,
                                         mxu_dtype=jnp.bfloat16))
    y = fwd_bf16(x, weight, bias)
    jax.block_until_ready(y)
    y_ref = reference_conv_relu(x, weight, bias, stride=1, padding=1)
    assert jnp.allclose(y, y_ref, atol=5e-2, rtol=5e-2), "mismatch vs reference (bf16)"

    print("KERNEL_OK")
</pallas_src>

<mosaic_0001>
module attributes {stable_mosaic.version = 11 : i64} {
  func.func @_matmul_bias_relu_kernel(%arg0: i32, %arg1: i32, %arg2: memref<1x16x16x36xf32, #tpu.memory_space<vmem>>, %arg3: memref<36x8xf32, #tpu.memory_space<vmem>>, %arg4: memref<1x8xf32, #tpu.memory_space<vmem>>, %arg5: memref<1x16x16x8xf32, #tpu.memory_space<vmem>>) attributes {dimension_semantics = [#tpu.dimension_semantics<parallel>, #tpu.dimension_semantics<parallel>], iteration_bounds = array<i64: 2, 1>, scalar_prefetch = 0 : i64, scratch_operands = 0 : i64, tpu.core_type = #tpu.core_type<tc>, window_params = [{transform_indices = @transform_0, window_bounds = array<i64: 1, 16, 16, 36>}, {pipeline_mode = #tpu.pipeline_mode<synchronous>, transform_indices = @transform_1, window_bounds = array<i64: 36, 8>}, {pipeline_mode = #tpu.pipeline_mode<synchronous>, transform_indices = @transform_2, window_bounds = array<i64: 1, 8>}, {transform_indices = @transform_3, window_bounds = array<i64: 1, 16, 16, 8>}]} {
    %c0 = arith.constant 0 : index
    %c0_0 = arith.constant 0 : index
    %c0_1 = arith.constant 0 : index
    %c0_2 = arith.constant 0 : index
    %0 = vector.load %arg2[%c0, %c0_0, %c0_1, %c0_2] : memref<1x16x16x36xf32, #tpu.memory_space<vmem>>, vector<1x16x16x36xf32>
    %1 = vector.shape_cast %0 : vector<1x16x16x36xf32> to vector<256x36xf32>
    %c0_3 = arith.constant 0 : index
    %c0_4 = arith.constant 0 : index
    %2 = vector.load %arg3[%c0_3, %c0_4] : memref<36x8xf32, #tpu.memory_space<vmem>>, vector<36x8xf32>
    %cst = arith.constant dense<0.000000e+00> : vector<256x8xf32>
    %3 = tpu.matmul %1, %2, %cst {dimension_numbers = #tpu.dot_dimension_numbers<[1], [0], [0], [1], [0, 0, 1, 1], [], []>} : vector<256x36xf32>, vector<36x8xf32>, vector<256x8xf32> -> vector<256x8xf32>
    %c0_5 = arith.constant 0 : index
    %c0_6 = arith.constant 0 : index
    %4 = vector.load %arg4[%c0_5, %c0_6] : memref<1x8xf32, #tpu.memory_space<vmem>>, vector<1x8xf32>
    %5 = vector.broadcast %4 : vector<1x8xf32> to vector<256x8xf32>
    %6 = arith.addf %3, %5 : vector<256x8xf32>
    %cst_7 = arith.constant 0.000000e+00 : f32
    %7 = vector.broadcast %cst_7 : f32 to vector<256x8xf32>
    %8 = arith.maximumf %6, %7 : vector<256x8xf32>
    %9 = vector.shape_cast %8 : vector<256x8xf32> to vector<1x16x16x8xf32>
    %c0_8 = arith.constant 0 : index
    %c0_9 = arith.constant 0 : index
    %c0_10 = arith.constant 0 : index
    %c0_11 = arith.constant 0 : index
    %10 = vector.load %arg5[%c0_8, %c0_9, %c0_10, %c0_11] : memref<1x16x16x8xf32, #tpu.memory_space<vmem>>, vector<1x16x16x8xf32>
    tpu.vector_store %arg5[%c0_8, %c0_9, %c0_10, %c0_11], %9 {strides = array<i32>} : memref<1x16x16x8xf32, #tpu.memory_space<vmem>>, vector<1x16x16x8xf32>,
    return
  }
  func.func @transform_0(%arg0: i32, %arg1: i32) -> (i32, i32, i32, i32) {
    %c0_i32 = arith.constant 0 : i32
    %c0_i32_0 = arith.constant 0 : i32
    %c0_i32_1 = arith.constant 0 : i32
    return %arg0, %arg1, %c0_i32, %c0_i32_0 : i32, i32, i32, i32
  }
  func.func @transform_1(%arg0: i32, %arg1: i32) -> (i32, i32) {
    %c0_i32 = arith.constant 0 : i32
    %c0_i32_0 = arith.constant 0 : i32
    %c0_i32_1 = arith.constant 0 : i32
    return %c0_i32, %c0_i32_0 : i32, i32
  }
  func.func @transform_2(%arg0: i32, %arg1: i32) -> (i32, i32) {
    %c0_i32 = arith.constant 0 : i32
    %c0_i32_0 = arith.constant 0 : i32
    %c0_i32_1 = arith.constant 0 : i32
    return %c0_i32, %c0_i32_0 : i32, i32
  }
  func.func @transform_3(%arg0: i32, %arg1: i32) -> (i32, i32, i32, i32) {
    %c0_i32 = arith.constant 0 : i32
    %c0_i32_0 = arith.constant 0 : i32
    %c0_i32_1 = arith.constant 0 : i32
    return %arg0, %arg1, %c0_i32, %c0_i32_0 : i32, i32, i32, i32
  }
}

</mosaic_0001>

<bundles_post_ra>
// kernel: conv_block_forward.1
= control target key start
LH: loop header
LB: loop body
LE: loop exit
PB: predicated region body
PF: predicated region fallthrough
CT: control target
= control target key end

     0   :  { %s970_s12 = smov 0   ;;  %s972_s13 = smov 0   ;;  %s1194_s0 = inlined_call_operand.vmem [shape: f32[2,16,16,36], index: 0, kind: input, shape index: {}]   ;;  %s1195_s1 = inlined_call_operand.vmem [shape: f32[36,8], index: 1, kind: input, shape index: {}]   ;;  %s1196_s2 = inlined_call_operand.vmem [shape: f32[1,8], index: 2, kind: input, shape index: {}]   ;;  %s1197_s3 = inlined_call_operand.vmem [shape: f32[2,16,16,8], index: 3, kind: output, shape index: {}]  }
   0x1   :  { %s974_s14 = smov 0  }
   0x2 LB: > { %s25_s15 = sadd.s32 1, %s944_s13  ;;  %p750_p0 = scmp.ge.s32.totalorder %s948_s14, 1  ;;  %s948_s14 = sphi %s974_s14, %s13_s14   ;;  %s944_s13 = sphi %s972_s13, %s1199_s13   ;;  %s940_s12 = sphi %s970_s12, %s1198_s12  }
   0x3   : > { %p27_p1 = scmp.ge.s32.totalorder %s25_s15, 2  ;;  %p159_p2 = scmp.lt.s32.totalorder %s948_s14, 3 }
   0x5   : > { %s1201_s15 = smov (%p27_p1, %s25_s15), 0  ;;  %p160_p3 = pnand %p750_p0, %p159_p2 }
   0x6   : > { %v247_v0 = vld [vmem:[%s1195_s1] sm:$0xff] (!%p160_p3)  ;;  %v248_v1 = vld [vmem:[%s1195_s1 + $0x8] sm:$0xff] (!%p160_p3)  ;;  %v249_v2 = vld [vmem:[%s1195_s1 + $0x10] sm:$0xff] (!%p160_p3)  ;;  %p194_p4 = scmp.lt.s32.totalorder (!%p160_p3), %s940_s12, 1  ;;  %vm259_vm0 = vcmask (!%p160_p3), 293888   ;;  %vm356_vm1 = vcmask (!%p160_p3), 1043456  }
   0x7   : > { %163 = sbr.rel (%p160_p3) target bundleno = 266 (0x10a), region = 32  ;;  %v888_v3 = vpack.c.bf16 (!%p160_p3), %v248_v1, %v247_v0  ;;  %v250_v4 = vld [vmem:[%s1195_s1 + $0x18] sm:$0xff] (!%p160_p3)  ;;  %v251_v6 = vld [vmem:[%s1195_s1 + $0x20] sm:$0xf] (!%p160_p3)  ;;  %vm617_vm2 = vcmask (!%p160_p3), 64512  }
   0x8   : > { %v892_v5 = vpack.c.bf16 (!%p160_p3), %v250_v4, %v249_v2  ;;  %v1080_v39 = vld [vmem:[%s1196_s2] ss:$0 sm:$0xff] (!%p160_p3) }
   0x9   : > { %889 = vmatprep.subr.bf16.mxu0 (!%p160_p3), %v888_v3  ;;  %896 = vmatprep.subr.bf16.mxu1 (!%p160_p3), %v888_v3 }
   0xa   : > { %891 = vmatpush3.bf16.msra.mxu0 (!%p160_p3), %v888_v3  ;;  %899 = vmatpush3.bf16.msra.mxu1 (!%p160_p3), %v888_v3 }
   0xb   : > { %893 = vmatprep.subr.bf16.mxu0 (!%p160_p3), %v892_v5  ;;  %897 = vmatprep.subr.bf16.mxu1 (!%p160_p3), %v892_v5 }
   0xe   : > { %s1203_s12 = smov (!%p194_p4, %s940_s12), 1  ;;  %895 = vmatpush3.bf16.msra.mxu0 %v892_v5  ;;  %900 = vmatpush3.bf16.msra.mxu1 %v892_v5 }
   0xf   : > { %s791_s24 = sshll.u32 %s1203_s12, 8  ;;  %838 = vmatprep.subr.msk.mxu0 %vm356_vm1, %v251_v6  ;;  %898 = vmatprep.subr.msk.mxu1 %vm356_vm1, %v251_v6 }
  0x10   : > { %s1008_s27 = scalar_lea.vmem %s1194_s0, %s791_s24  ;;  %s1089_s7 = scalar_lea.vmem %s1197_s3, %s791_s24 }
  0x11   : > { %v215_v7 = vld [vmem:[%s1008_s27] sm:$0xff]  ;;  %v216_v9 = vld [vmem:[%s1008_s27 + $0x8] sm:$0xff]  ;;  %v217_v11 = vld [vmem:[%s1008_s27 + $0x10] sm:$0xff] }
  0x12   : > { %v231_v8 = vld [vmem:[%s1008_s27 + $0x80] sm:$0xff]  ;;  %840 = vmatprep.mubr.msk.f32.mxu0 %vm259_vm0, %v215_v7  ;;  %v232_v10 = vld [vmem:[%s1008_s27 + $0x88] sm:$0xff]  ;;  %v233_v12 = vld [vmem:[%s1008_s27 + $0x90] sm:$0xff]  ;;  %839 = vmatpush3.msk.msra.mxu0 %vm356_vm1, %v251_v6 }
  0x13   : > { %864 = vmatprep.mubr.msk.f32.mxu1 %vm259_vm0, %v231_v8  ;;  %901 = vmatpush3.msk.msra.mxu1 %vm356_vm1, %v251_v6  ;;  %v218_v13 = vld [vmem:[%s1008_s27 + $0x18] sm:$0xff]  ;;  %v219_v15 = vld [vmem:[%s1008_s27 + $0x20] sm:$0xff]  ;;  %v220_v17 = vld [vmem:[%s1008_s27 + $0x28] sm:$0xff] }
  0x14   : > { %841 = vmatmul.mubr.msk.f32.vlgmr.msra.gmra.mrb[0].mxu0 %vm259_vm0, %v216_v9  ;;  %865 = vmatmul.mubr.msk.f32.vlgmr.msra.gmra.mrb[0].mxu1 %vm259_vm0, %v232_v10  ;;  %v234_v14 = vld [vmem:[%s1008_s27 + $0x98] sm:$0xff]  ;;  %v235_v16 = vld [vmem:[%s1008_s27 + $0xa0] sm:$0xff]  ;;  %v236_v18 = vld [vmem:[%s1008_s27 + $0xa8] sm:$0xff] }
  0x15   : > { %843 = vmatprep.mubr.msk.f32.mxu0 %vm259_vm0, %v217_v11  ;;  %867 = vmatprep.mubr.msk.f32.mxu1 %vm259_vm0, %v233_v12  ;;  %v221_v19 = vld [vmem:[%s1008_s27 + $0x30] sm:$0xff]  ;;  %v222_v21 = vld [vmem:[%s1008_s27 + $0x38] sm:$0xff]  ;;  %v223_v23 = vld [vmem:[%s1008_s27 + $0x40] sm:$0xff] }
  0x16   : > { %v237_v20 = vld [vmem:[%s1008_s27 + $0xb0] sm:$0xff]  ;;  %v238_v22 = vld [vmem:[%s1008_s27 + $0xb8] sm:$0xff]  ;;  %v239_v24 = vld [vmem:[%s1008_s27 + $0xc0] sm:$0xff] }
  0x17   : > { %v224_v25 = vld [vmem:[%s1008_s27 + $0x48] sm:$0xff]  ;;  %v225_v27 = vld [vmem:[%s1008_s27 + $0x50] sm:$0xff]  ;;  %v226_v29 = vld [vmem:[%s1008_s27 + $0x58] sm:$0xff] }
  0x18   : > { %844 = vmatmul.mubr.msk.f32.gmra.mrb[2].mxu0 %vm259_vm0, %v218_v13  ;;  %868 = vmatmul.mubr.msk.f32.gmra.mrb[2].mxu1 %vm259_vm0, %v234_v14  ;;  %v240_v26 = vld [vmem:[%s1008_s27 + $0xc8] sm:$0xff]  ;;  %v241_v28 = vld [vmem:[%s1008_s27 + $0xd0] sm:$0xff]  ;;  %v242_v30 = vld [vmem:[%s1008_s27 + $0xd8] sm:$0xff] }
  0x19   : > { %846 = vmatprep.mubr.msk.f32.mxu0 %vm259_vm0, %v219_v15  ;;  %870 = vmatprep.mubr.msk.f32.mxu1 %vm259_vm0, %v235_v16  ;;  %v227_v31 = vld [vmem:[%s1008_s27 + $0x60] sm:$0xff]  ;;  %v228_v33 = vld [vmem:[%s1008_s27 + $0x68] sm:$0xff]  ;;  %v229_v35 = vld [vmem:[%s1008_s27 + $0x70] sm:$0xff] }
  0x1a   : > { %v243_v32 = vld [vmem:[%s1008_s27 + $0xe0] sm:$0xff]  ;;  %v244_v34 = vld [vmem:[%s1008_s27 + $0xe8] sm:$0xff]  ;;  %v245_v36 = vld [vmem:[%s1008_s27 + $0xf0] sm:$0xff] }
  0x1b   : > { %v230_v37 = vld [vmem:[%s1008_s27 + $0x78] sm:$0xff] }
  0x1c   : > { %847 = vmatmul.mubr.msk.f32.gmra.mrb[4].mxu0 %vm259_vm0, %v220_v17  ;;  %871 = vmatmul.mubr.msk.f32.gmra.mrb[4].mxu1 %vm259_vm0, %v236_v18  ;;  %v246_v38 = vld [vmem:[%s1008_s27 + $0xf8] sm:$0xff] }
  0x1d   : > { %849 = vmatprep.mubr.msk.f32.mxu0 %vm259_vm0, %v221_v19  ;;  %873 = vmatprep.mubr.msk.f32.mxu1 %vm259_vm0, %v237_v20 }
  0x20   : > { %850 = vmatmul.mubr.msk.f32.gmra.mrb[6].mxu0 %vm259_vm0, %v222_v21  ;;  %874 = vmatmul.mubr.msk.f32.gmra.mrb[6].mxu1 %vm259_vm0, %v238_v22 }
  0x21   : > { %852 = vmatprep.mubr.msk.f32.mxu0 %vm259_vm0, %v223_v23  ;;  %876 = vmatprep.mubr.msk.f32.mxu1 %vm259_vm0, %v239_v24 }
  0x24   : > { %853 = vmatmul.mubr.msk.f32.gmra.mrb[8].mxu0 %vm259_vm0, %v224_v25  ;;  %877 = vmatmul.mubr.msk.f32.gmra.mrb[8].mxu1 %vm259_vm0, %v240_v26 }
  0x25   : > { %855 = vmatprep.mubr.msk.f32.mxu0 %vm259_vm0, %v225_v27  ;;  %879 = vmatprep.mubr.msk.f32.mxu1 %vm259_vm0, %v241_v28 }
  0x28   : > { %856 = vmatmul.mubr.msk.f32.gmra.mrb[10].mxu0 %vm259_vm0, %v226_v29  ;;  %880 = vmatmul.mubr.msk.f32.gmra.mrb[10].mxu1 %vm259_vm0, %v242_v30 }
  0x29   : > { %858 = vmatprep.mubr.msk.f32.mxu0 %vm259_vm0, %v227_v31  ;;  %882 = vmatprep.mubr.msk.f32.mxu1 %vm259_vm0, %v243_v32 }
  0x2c   : > { %859 = vmatmul.mubr.msk.f32.gmra.mrb[12].mxu0 %vm259_vm0, %v228_v33  ;;  %883 = vmatmul.mubr.msk.f32.gmra.mrb[12].mxu1 %vm259_vm0, %v244_v34 }
  0x2d   : > { %861 = vmatprep.mubr.msk.f32.mxu0 %vm259_vm0, %v229_v35  ;;  %885 = vmatprep.mubr.msk.f32.mxu1 %vm259_vm0, %v245_v36 }
  0x30   : > { %862 = vmatmul.mubr.msk.f32.gmra.mrb[14].mxu0 %vm259_vm0, %v230_v37  ;;  %886 = vmatmul.mubr.msk.f32.gmra.mrb[14].mxu1 %vm259_vm0, %v246_v38 }
  0xe7   : > { %v842_v40 = vpop.f32.mrb[0].mxu0  ;;  %v866_v41 = vpop.f32.mrb[0].mxu1 }
  0xe8   : > { %v432_v42 = vadd.f32 %v842_v40, %v1080_v39  ;;  %v512_v43 = vadd.f32 %v866_v41, %v1080_v39  ;;  %v426_v44 = vpop.f32.mrb[1].mxu0  ;;  %v506_v45 = vpop.f32.mrb[1].mxu1 }
  0xe9   : > { %v427_v46 = vadd.f32 %v1080_v39, %v426_v44  ;;  %v507_v47 = vadd.f32 %v1080_v39, %v506_v45 }
  0xea   : > { %v586_v48 = vmax.f32 %v432_v42, 0.0  ;;  %v602_v49 = vmax.f32 %v512_v43, 0.0 }
  0xeb   : > { %v585_v50 = vmax.f32 %v427_v46, 0.0  ;;  %v601_v51 = vmax.f32 %v507_v47, 0.0  ;;  %v845_v52 = vpop.f32.mrb[2].mxu0  ;;  %v869_v53 = vpop.f32.mrb[2].mxu1 }
  0xec   : > { %619 = vst.msk [vmem:[%s1089_s7 + $0x8] sm:$0xff] %vm617_vm2, %v586_v48  ;;  %635 = vst.msk [vmem:[%s1089_s7 + $0x88] sm:$0xff] %vm617_vm2, %v602_v49  ;;  %v442_v54 = vadd.f32 %v845_v52, %v1080_v39  ;;  %v522_v55 = vadd.f32 %v869_v53, %v1080_v39  ;;  %v436_v56 = vpop.f32.mrb[3].mxu0  ;;  %v516_v57 = vpop.f32.mrb[3].mxu1 }
  0xed   : > { %618 = vst.msk [vmem:[%s1089_s7] sm:$0xff] %vm617_vm2, %v585_v50  ;;  %634 = vst.msk [vmem:[%s1089_s7 + $0x80] sm:$0xff] %vm617_vm2, %v601_v51  ;;  %v437_v58 = vadd.f32 %v1080_v39, %v436_v56  ;;  %v517_v59 = vadd.f32 %v1080_v39, %v516_v57 }
  0xee   : > { %v588_v60 = vmax.f32 %v442_v54, 0.0  ;;  %v604_v61 = vmax.f32 %v522_v55, 0.0 }
  0xef   : > { %v587_v62 = vmax.f32 %v437_v58, 0.0  ;;  %v603_v63 = vmax.f32 %v517_v59, 0.0  ;;  %v848_v0 = vpop.f32.mrb[4].mxu0  ;;  %v872_v1 = vpop.f32.mrb[4].mxu1 }
  0xf0   : > { %621 = vst.msk [vmem:[%s1089_s7 + $0x18] sm:$0xff] %vm617_vm2, %v588_v60  ;;  %637 = vst.msk [vmem:[%s1089_s7 + $0x98] sm:$0xff] %vm617_vm2, %v604_v61  ;;  %v452_v2 = vadd.f32 %v848_v0, %v1080_v39  ;;  %v532_v3 = vadd.f32 %v872_v1, %v1080_v39  ;;  %v446_v4 = vpop.f32.mrb[5].mxu0  ;;  %v526_v5 = vpop.f32.mrb[5].mxu1 }
  0xf1   : > { %620 = vst.msk [vmem:[%s1089_s7 + $0x10] sm:$0xff] %vm617_vm2, %v587_v62  ;;  %636 = vst.msk [vmem:[%s1089_s7 + $0x90] sm:$0xff] %vm617_vm2, %v603_v63  ;;  %v447_v6 = vadd.f32 %v1080_v39, %v446_v4  ;;  %v527_v7 = vadd.f32 %v1080_v39, %v526_v5 }
  0xf2   : > { %v590_v8 = vmax.f32 %v452_v2, 0.0  ;;  %v606_v9 = vmax.f32 %v532_v3, 0.0 }
  0xf3   : > { %v589_v10 = vmax.f32 %v447_v6, 0.0  ;;  %v605_v11 = vmax.f32 %v527_v7, 0.0  ;;  %v851_v12 = vpop.f32.mrb[6].mxu0  ;;  %v875_v13 = vpop.f32.mrb[6].mxu1 }
  0xf4   : > { %623 = vst.msk [vmem:[%s1089_s7 + $0x28] sm:$0xff] %vm617_vm2, %v590_v8  ;;  %639 = vst.msk [vmem:[%s1089_s7 + $0xa8] sm:$0xff] %vm617_vm2, %v606_v9  ;;  %v462_v14 = vadd.f32 %v851_v12, %v1080_v39  ;;  %v542_v15 = vadd.f32 %v875_v13, %v1080_v39  ;;  %v456_v16 = vpop.f32.mrb[7].mxu0  ;;  %v536_v17 = vpop.f32.mrb[7].mxu1 }
  0xf5   : > { %622 = vst.msk [vmem:[%s1089_s7 + $0x20] sm:$0xff] %vm617_vm2, %v589_v10  ;;  %638 = vst.msk [vmem:[%s1089_s7 + $0xa0] sm:$0xff] %vm617_vm2, %v605_v11  ;;  %v457_v18 = vadd.f32 %v1080_v39, %v456_v16  ;;  %v537_v19 = vadd.f32 %v1080_v39, %v536_v17 }
  0xf6   : > { %v592_v20 = vmax.f32 %v462_v14, 0.0  ;;  %v608_v21 = vmax.f32 %v542_v15, 0.0 }
  0xf7   : > { %v591_v22 = vmax.f32 %v457_v18, 0.0  ;;  %v607_v23 = vmax.f32 %v537_v19, 0.0  ;;  %v854_v24 = vpop.f32.mrb[8].mxu0  ;;  %v878_v25 = vpop.f32.mrb[8].mxu1 }
  0xf8   : > { %625 = vst.msk [vmem:[%s1089_s7 + $0x38] sm:$0xff] %vm617_vm2, %v592_v20  ;;  %641 = vst.msk [vmem:[%s1089_s7 + $0xb8] sm:$0xff] %vm617_vm2, %v608_v21  ;;  %v472_v26 = vadd.f32 %v854_v24, %v1080_v39  ;;  %v552_v27 = vadd.f32 %v878_v25, %v1080_v39  ;;  %v466_v28 = vpop.f32.mrb[9].mxu0  ;;  %v546_v29 = vpop.f32.mrb[9].mxu1 }
  0xf9   : > { %624 = vst.msk [vmem:[%s1089_s7 + $0x30] sm:$0xff] %vm617_vm2, %v591_v22  ;;  %640 = vst.msk [vmem:[%s1089_s7 + $0xb0] sm:$0xff] %vm617_vm2, %v607_v23  ;;  %v467_v30 = vadd.f32 %v1080_v39, %v466_v28  ;;  %v547_v31 = vadd.f32 %v1080_v39, %v546_v29 }
  0xfa   : > { %v594_v32 = vmax.f32 %v472_v26, 0.0  ;;  %v610_v33 = vmax.f32 %v552_v27, 0.0 }
  0xfb   : > { %v593_v34 = vmax.f32 %v467_v30, 0.0  ;;  %v609_v35 = vmax.f32 %v547_v31, 0.0  ;;  %v857_v36 = vpop.f32.mrb[10].mxu0  ;;  %v881_v37 = vpop.f32.mrb[10].mxu1 }
  0xfc   : > { %627 = vst.msk [vmem:[%s1089_s7 + $0x48] sm:$0xff] %vm617_vm2, %v594_v32  ;;  %643 = vst.msk [vmem:[%s1089_s7 + $0xc8] sm:$0xff] %vm617_vm2, %v610_v33  ;;  %v482_v38 = vadd.f32 %v857_v36, %v1080_v39  ;;  %v562_v40 = vadd.f32 %v881_v37, %v1080_v39  ;;  %v476_v41 = vpop.f32.mrb[11].mxu0  ;;  %v556_v42 = vpop.f32.mrb[11].mxu1 }
  0xfd   : > { %626 = vst.msk [vmem:[%s1089_s7 + $0x40] sm:$0xff] %vm617_vm2, %v593_v34  ;;  %642 = vst.msk [vmem:[%s1089_s7 + $0xc0] sm:$0xff] %vm617_vm2, %v609_v35  ;;  %v477_v43 = vadd.f32 %v1080_v39, %v476_v41  ;;  %v557_v44 = vadd.f32 %v1080_v39, %v556_v42 }
  0xfe   : > { %v596_v45 = vmax.f32 %v482_v38, 0.0  ;;  %v612_v46 = vmax.f32 %v562_v40, 0.0 }
  0xff   : > { %v595_v47 = vmax.f32 %v477_v43, 0.0  ;;  %v611_v48 = vmax.f32 %v557_v44, 0.0  ;;  %v860_v49 = vpop.f32.mrb[12].mxu0  ;;  %v884_v50 = vpop.f32.mrb[12].mxu1 }
 0x100   : > { %629 = vst.msk [vmem:[%s1089_s7 + $0x58] sm:$0xff] %vm617_vm2, %v596_v45  ;;  %645 = vst.msk [vmem:[%s1089_s7 + $0xd8] sm:$0xff] %vm617_vm2, %v612_v46  ;;  %v492_v51 = vadd.f32 %v860_v49, %v1080_v39  ;;  %v572_v52 = vadd.f32 %v884_v50, %v1080_v39  ;;  %v486_v53 = vpop.f32.mrb[13].mxu0  ;;  %v566_v54 = vpop.f32.mrb[13].mxu1 }
 0x101   : > { %628 = vst.msk [vmem:[%s1089_s7 + $0x50] sm:$0xff] %vm617_vm2, %v595_v47  ;;  %644 = vst.msk [vmem:[%s1089_s7 + $0xd0] sm:$0xff] %vm617_vm2, %v611_v48  ;;  %v487_v55 = vadd.f32 %v1080_v39, %v486_v53  ;;  %v567_v56 = vadd.f32 %v1080_v39, %v566_v54 }
 0x102   : > { %v598_v57 = vmax.f32 %v492_v51, 0.0  ;;  %v614_v58 = vmax.f32 %v572_v52, 0.0 }
 0x103   : > { %v597_v59 = vmax.f32 %v487_v55, 0.0  ;;  %v613_v60 = vmax.f32 %v567_v56, 0.0  ;;  %v863_v61 = vpop.f32.mrb[14].mxu0  ;;  %v887_v62 = vpop.f32.mrb[14].mxu1 }
 0x104   : > { %631 = vst.msk [vmem:[%s1089_s7 + $0x68] sm:$0xff] %vm617_vm2, %v598_v57  ;;  %647 = vst.msk [vmem:[%s1089_s7 + $0xe8] sm:$0xff] %vm617_vm2, %v614_v58  ;;  %v502_v63 = vadd.f32 %v863_v61, %v1080_v39  ;;  %v582_v0 = vadd.f32 %v887_v62, %v1080_v39  ;;  %v496_v1 = vpop.f32.mrb[15].mxu0  ;;  %v576_v2 = vpop.f32.mrb[15].mxu1 }
 0x105   : > { %630 = vst.msk [vmem:[%s1089_s7 + $0x60] sm:$0xff] %vm617_vm2, %v597_v59  ;;  %646 = vst.msk [vmem:[%s1089_s7 + $0xe0] sm:$0xff] %vm617_vm2, %v613_v60  ;;  %v497_v3 = vadd.f32 %v1080_v39, %v496_v1  ;;  %v577_v4 = vadd.f32 %v1080_v39, %v576_v2 }
 0x106   : > { %v600_v5 = vmax.f32 %v502_v63, 0.0  ;;  %v616_v6 = vmax.f32 %v582_v0, 0.0 }
 0x107   : > { %v599_v7 = vmax.f32 %v497_v3, 0.0  ;;  %v615_v8 = vmax.f32 %v577_v4, 0.0 }
 0x108   : > { %633 = vst.msk [vmem:[%s1089_s7 + $0x78] sm:$0xff] %vm617_vm2, %v600_v5  ;;  %649 = vst.msk [vmem:[%s1089_s7 + $0xf8] sm:$0xff] %vm617_vm2, %v616_v6 }
 0x109   : > { %632 = vst.msk [vmem:[%s1089_s7 + $0x70] sm:$0xff] %vm617_vm2, %v599_v7  ;;  %648 = vst.msk [vmem:[%s1089_s7 + $0xf0] sm:$0xff] %vm617_vm2, %v615_v8 }
 0x10a PF: > { %s13_s14 = sadd.s32 1, %s948_s14   ;;  %s1198_s12 = smov %s944_s13 }
 0x10b   : > { %p10_p5 = scmp.ge.s32.totalorder %s13_s14, 4   ;;  %s1199_s13 = smov %s1201_s15 }
 0x10d   :  { %12 = sbr.rel (!%p10_p5) target bundleno = 2 (0x2), region = 62 }

</bundles_post_ra>
